<compile_context>
chip_gen: v6e
topology: v6e:2x2x1
jax: 0.10.0
libtpu: 0.0.40
codegen_flags: <defaults>
</compile_context>

<pallas_src>
import jax
import jax.numpy as jnp
from jax.experimental import pallas as pl
from jax.experimental.pallas import tpu as pltpu

HIDDEN_SIZE = 8
INPUT_SIZE = 32    # stands in for len(training[0])
OUTPUT_SIZE = 8    # stands in for len(output[0])
BATCH = 2

LANE = 128          # TPU lane width
ROW_ALIGN = 16      # bf16 sublane packing -> keep row tiles 16-aligned
MAX_TILE_B = 2048   # rows per grid step (amortizes ~0.35us/step; ~1.25 MiB VMEM)
SPLIT_MIN_ROWS = 1024  # below this a single grid step is cheapest
TINY_BATCH = 256    # below this plain XLA beats pallas_call overhead
NEG_BIG = -1e30     # "minus infinity" for padded logit lanes


def _round_up(x, m):
    return ((x + m - 1) // m) * m


def _cdiv(a, b):
    return -(-a // b)


def _pick_tile_b(batch):
    """Pick a batch tile that minimizes padding and (for large batches) yields
    an even number of >=2 grid steps so v7x's two TensorCores both get work."""
    aligned = _round_up(batch, ROW_ALIGN)
    if aligned <= SPLIT_MIN_ROWS:
        return aligned                      # single step: splitting is pure overhead
    n_tiles = max(2, _cdiv(aligned, MAX_TILE_B))
    if n_tiles % 2:
        n_tiles += 1                        # even step count -> balanced megacore split
    return _round_up(_cdiv(batch, n_tiles), ROW_ALIGN)


def mlp_kernel(x_ref, w1_ref, b1_ref, w2_ref, b2_ref, w3_ref, b3_ref, o_ref):
    # fc1 + relu: x (TILE_B, IN) bf16  @  w1 (IN, H_PAD) bf16, f32 accumulate
    h1 = jnp.dot(x_ref[...], w1_ref[...],
                 preferred_element_type=jnp.float32) + b1_ref[...]
    h1 = jnp.maximum(h1, 0.0)
    # fc2 + relu (f32, VMEM-resident; padded rows/cols are zero -> padded lanes stay 0)
    h2 = jnp.dot(h1, w2_ref[...],
                 preferred_element_type=jnp.float32) + b2_ref[...]
    h2 = jnp.maximum(h2, 0.0)
    # fc3 (padded lanes of b3 are -1e30 -> exp underflows to 0 below)
    logits = jnp.dot(h2, w3_ref[...],
                     preferred_element_type=jnp.float32) + b3_ref[...]
    # numerically stable softmax over the feature (lane) axis
    m = jnp.max(logits, axis=1, keepdims=True)
    e = jnp.exp(logits - m)
    denom = jnp.sum(e, axis=1, keepdims=True)
    o_ref[...] = (e * pl.reciprocal(denom, approx=True)).astype(o_ref.dtype)


def reference_forward(x, params):
    w1, b1, w2, b2, w3, b3 = params
    h1 = jnp.maximum(x @ w1 + b1, 0.0)
    h2 = jnp.maximum(h1 @ w2 + b2, 0.0)
    logits = h2 @ w3 + b3
    return jax.nn.softmax(logits, axis=1)


def neural_net_forward(x, params, *, tile_b=None, out_dtype=jnp.bfloat16,
                       return_padded=False, force_pallas=False):
    """x: (batch, input_size) f32. params: unpadded (w1,b1,w2,b2,w3,b3)."""
    w1, b1, w2, b2, w3, b3 = params
    batch, in_features = x.shape
    hidden = w1.shape[1]
    out_features = w3.shape[1]

    # Tiny batches: the fused XLA chain is cheaper than any pallas_call.
    if batch < TINY_BATCH and not force_pallas:
        return reference_forward(x, params).astype(out_dtype)

    h_pad = _round_up(hidden, LANE)
    o_pad = _round_up(out_features, LANE)

    # --- lane-dense padding of weights / biases (one-time, XLA side) ---
    # Layer-1 weights in bf16 (matches bf16 x reads, bf16-native MXU on all chips);
    # everything else stays f32 (VMEM-resident, precision-cheap, v5e-safe).
    w1p = jnp.zeros((in_features, h_pad), jnp.bfloat16).at[:, :hidden].set(
        w1.astype(jnp.bfloat16))
    b1p = jnp.zeros((1, h_pad), jnp.float32).at[:, :hidden].set(b1)
    w2p = jnp.zeros((h_pad, h_pad), jnp.float32).at[:hidden, :hidden].set(w2)
    b2p = jnp.zeros((1, h_pad), jnp.float32).at[:, :hidden].set(b2)
    w3p = jnp.zeros((h_pad, o_pad), jnp.float32).at[:hidden, :out_features].set(w3)
    b3p = jnp.full((1, o_pad), NEG_BIG, jnp.float32).at[:, :out_features].set(b3)

    # --- batch padding + batch tiling ---
    if tile_b is None:
        tile_b = _pick_tile_b(batch)
    tile_b = _round_up(tile_b, ROW_ALIGN)
    b_padded = _round_up(batch, tile_b)

    # x read in bf16: halves the HBM read for this memory-bound kernel.
    xp = jnp.zeros((b_padded, in_features), jnp.bfloat16).at[:batch].set(
        x.astype(jnp.bfloat16))

    weight_bytes = (w1p.size * 2
                    + (b1p.size + w2p.size + b2p.size + w3p.size + b3p.size) * 4)
    cost = pl.CostEstimate(
        flops=2 * b_padded * (in_features * h_pad + h_pad * h_pad + h_pad * o_pad),
        transcendentals=b_padded * o_pad,
        bytes_accessed=(b_padded * in_features * 2          # bf16 x read
                        + b_padded * o_pad * jnp.dtype(out_dtype).itemsize
                        + weight_bytes),
    )

    grid = (b_padded // tile_b,)
    out_padded = pl.pallas_call(
        mlp_kernel,
        out_shape=jax.ShapeDtypeStruct((b_padded, o_pad), out_dtype),
        grid=grid,
        in_specs=[
            pl.BlockSpec((tile_b, in_features), lambda i: (i, 0)),   # x: batch-tiled
            pl.BlockSpec((in_features, h_pad), lambda i: (0, 0)),    # weights: resident
            pl.BlockSpec((1, h_pad), lambda i: (0, 0)),
            pl.BlockSpec((h_pad, h_pad), lambda i: (0, 0)),
            pl.BlockSpec((1, h_pad), lambda i: (0, 0)),
            pl.BlockSpec((h_pad, o_pad), lambda i: (0, 0)),
            pl.BlockSpec((1, o_pad), lambda i: (0, 0)),
        ],
        out_specs=pl.BlockSpec((tile_b, o_pad), lambda i: (i, 0)),
        compiler_params=pltpu.CompilerParams(
            dimension_semantics=("parallel",),  # shard batch tiles across TCs (v7x)
        ),
        cost_estimate=cost,
    )(xp, w1p, b1p, w2p, b2p, w3p, b3p)

    if return_padded:
        # Consumers that accept the lane-dense padded slab skip an extra HBM pass.
        return out_padded
    return out_padded[:batch, :out_features]


def init_params(key):
    k1, k2, k3, k4, k5, k6 = jax.random.split(key, 6)
    # Weights stored (in, out) so y = x @ W + b — equivalent to PyTorch
    # nn.Linear's x @ W.T + b with W stored (out, in).
    w1 = jax.random.normal(k1, (INPUT_SIZE, HIDDEN_SIZE), jnp.float32) * 0.1
    b1 = jax.random.normal(k2, (1, HIDDEN_SIZE), jnp.float32) * 0.1
    w2 = jax.random.normal(k3, (HIDDEN_SIZE, HIDDEN_SIZE), jnp.float32) * 0.1
    b2 = jax.random.normal(k4, (1, HIDDEN_SIZE), jnp.float32) * 0.1
    w3 = jax.random.normal(k5, (HIDDEN_SIZE, OUTPUT_SIZE), jnp.float32) * 0.1
    b3 = jax.random.normal(k6, (1, OUTPUT_SIZE), jnp.float32) * 0.1
    return w1, b1, w2, b2, w3, b3


if __name__ == "__main__":
    key = jax.random.PRNGKey(0)
    kx, kp, kb = jax.random.split(key, 3)
    params = init_params(kp)

    # --- small demo batch (module-consistent shape); force the Pallas path ---
    x = jax.random.normal(kx, (BATCH, INPUT_SIZE), jnp.float32)
    out = neural_net_forward(x, params, force_pallas=True)
    out = jax.block_until_ready(out).astype(jnp.float32)

    ref = reference_forward(x, params)
    assert out.shape == (BATCH, OUTPUT_SIZE)
    # bf16 I/O + approx EUP reciprocal -> ~1e-2 tolerance
    assert jnp.allclose(out, ref, atol=2e-2, rtol=2e-2)
    assert jnp.allclose(jnp.sum(out, axis=1), jnp.ones((BATCH,)), atol=2e-2)

    # --- multi-tile path (exercises batch tiling / padding / megacore split) ---
    xb = jax.random.normal(kb, (1027, INPUT_SIZE), jnp.float32)
    outb = neural_net_forward(xb, params, force_pallas=True)
    outb = jax.block_until_ready(outb).astype(jnp.float32)
    refb = reference_forward(xb, params)
    assert outb.shape == (1027, OUTPUT_SIZE)
    assert jnp.allclose(outb, refb, atol=2e-2, rtol=2e-2)
    assert jnp.allclose(jnp.sum(outb, axis=1), jnp.ones((1027,)), atol=2e-2)

    print("KERNEL_OK")
</pallas_src>

<mosaic_0001>
module attributes {stable_mosaic.version = 11 : i64} {
  func.func @mlp_kernel(%arg0: i32, %arg1: memref<16x32xbf16, #tpu.memory_space<vmem>>, %arg2: memref<32x128xbf16, #tpu.memory_space<vmem>>, %arg3: memref<1x128xf32, #tpu.memory_space<vmem>>, %arg4: memref<128x128xf32, #tpu.memory_space<vmem>>, %arg5: memref<1x128xf32, #tpu.memory_space<vmem>>, %arg6: memref<128x128xf32, #tpu.memory_space<vmem>>, %arg7: memref<1x128xf32, #tpu.memory_space<vmem>>, %arg8: memref<16x128xbf16, #tpu.memory_space<vmem>>) attributes {dimension_semantics = [#tpu.dimension_semantics<parallel>], iteration_bounds = array<i64: 1>, scalar_prefetch = 0 : i64, scratch_operands = 0 : i64, tpu.core_type = #tpu.core_type<tc>, window_params = [{transform_indices = @transform_0, window_bounds = array<i64: 16, 32>}, {pipeline_mode = #tpu.pipeline_mode<synchronous>, transform_indices = @transform_1, window_bounds = array<i64: 32, 128>}, {pipeline_mode = #tpu.pipeline_mode<synchronous>, transform_indices = @transform_2, window_bounds = array<i64: 1, 128>}, {pipeline_mode = #tpu.pipeline_mode<synchronous>, transform_indices = @transform_3, window_bounds = array<i64: 128, 128>}, {pipeline_mode = #tpu.pipeline_mode<synchronous>, transform_indices = @transform_4, window_bounds = array<i64: 1, 128>}, {pipeline_mode = #tpu.pipeline_mode<synchronous>, transform_indices = @transform_5, window_bounds = array<i64: 128, 128>}, {pipeline_mode = #tpu.pipeline_mode<synchronous>, transform_indices = @transform_6, window_bounds = array<i64: 1, 128>}, {transform_indices = @transform_7, window_bounds = array<i64: 16, 128>}]} {
    %c0 = arith.constant 0 : index
    %c0_0 = arith.constant 0 : index
    %0 = vector.load %arg1[%c0, %c0_0] : memref<16x32xbf16, #tpu.memory_space<vmem>>, vector<16x32xbf16>
    %c0_1 = arith.constant 0 : index
    %c0_2 = arith.constant 0 : index
    %1 = vector.load %arg2[%c0_1, %c0_2] : memref<32x128xbf16, #tpu.memory_space<vmem>>, vector<32x128xbf16>
    %cst = arith.constant dense<0.000000e+00> : vector<16x128xf32>
    %2 = tpu.matmul %0, %1, %cst {dimension_numbers = #tpu.dot_dimension_numbers<[1], [0], [0], [1], [0, 0, 1, 1], [], []>} : vector<16x32xbf16>, vector<32x128xbf16>, vector<16x128xf32> -> vector<16x128xf32>
    %c0_3 = arith.constant 0 : index
    %c0_4 = arith.constant 0 : index
    %3 = vector.load %arg3[%c0_3, %c0_4] : memref<1x128xf32, #tpu.memory_space<vmem>>, vector<1x128xf32>
    %4 = vector.broadcast %3 : vector<1x128xf32> to vector<16x128xf32>
    %5 = arith.addf %2, %4 : vector<16x128xf32>
    %cst_5 = arith.constant 0.000000e+00 : f32
    %6 = vector.broadcast %cst_5 : f32 to vector<16x128xf32>
    %7 = arith.maximumf %5, %6 : vector<16x128xf32>
    %c0_6 = arith.constant 0 : index
    %c0_7 = arith.constant 0 : index
    %8 = vector.load %arg4[%c0_6, %c0_7] : memref<128x128xf32, #tpu.memory_space<vmem>>, vector<128x128xf32>
    %cst_8 = arith.constant dense<0.000000e+00> : vector<16x128xf32>
    %9 = tpu.matmul %7, %8, %cst_8 {dimension_numbers = #tpu.dot_dimension_numbers<[1], [0], [0], [1], [0, 0, 1, 1], [], []>} : vector<16x128xf32>, vector<128x128xf32>, vector<16x128xf32> -> vector<16x128xf32>
    %c0_9 = arith.constant 0 : index
    %c0_10 = arith.constant 0 : index
    %10 = vector.load %arg5[%c0_9, %c0_10] : memref<1x128xf32, #tpu.memory_space<vmem>>, vector<1x128xf32>
    %11 = vector.broadcast %10 : vector<1x128xf32> to vector<16x128xf32>
    %12 = arith.addf %9, %11 : vector<16x128xf32>
    %cst_11 = arith.constant 0.000000e+00 : f32
    %13 = vector.broadcast %cst_11 : f32 to vector<16x128xf32>
    %14 = arith.maximumf %12, %13 : vector<16x128xf32>
    %c0_12 = arith.constant 0 : index
    %c0_13 = arith.constant 0 : index
    %15 = vector.load %arg6[%c0_12, %c0_13] : memref<128x128xf32, #tpu.memory_space<vmem>>, vector<128x128xf32>
    %cst_14 = arith.constant dense<0.000000e+00> : vector<16x128xf32>
    %16 = tpu.matmul %14, %15, %cst_14 {dimension_numbers = #tpu.dot_dimension_numbers<[1], [0], [0], [1], [0, 0, 1, 1], [], []>} : vector<16x128xf32>, vector<128x128xf32>, vector<16x128xf32> -> vector<16x128xf32>
    %c0_15 = arith.constant 0 : index
    %c0_16 = arith.constant 0 : index
    %17 = vector.load %arg7[%c0_15, %c0_16] : memref<1x128xf32, #tpu.memory_space<vmem>>, vector<1x128xf32>
    %18 = vector.broadcast %17 : vector<1x128xf32> to vector<16x128xf32>
    %19 = arith.addf %16, %18 : vector<16x128xf32>
    %cst_17 = arith.constant dense<0xFF800000> : vector<16xf32>
    %20 = vector.multi_reduction <maximumf>, %19, %cst_17 [1] : vector<16x128xf32> to vector<16xf32>
    %21 = vector.shape_cast %20 : vector<16xf32> to vector<16x1xf32>
    %22 = vector.broadcast %21 : vector<16x1xf32> to vector<16x128xf32>
    %23 = arith.subf %19, %22 : vector<16x128xf32>
    %24 = math.exp %23 : vector<16x128xf32>
    %cst_18 = arith.constant dense<0.000000e+00> : vector<16xf32>
    %25 = vector.multi_reduction <add>, %24, %cst_18 [1] : vector<16x128xf32> to vector<16xf32>
    %26 = vector.shape_cast %25 : vector<16xf32> to vector<16x1xf32>
    %27 = tpu.reciprocal %26 {approx = true} : vector<16x1xf32> -> vector<16x1xf32>
    %28 = vector.broadcast %27 : vector<16x1xf32> to vector<16x128xf32>
    %29 = arith.mulf %24, %28 : vector<16x128xf32>
    %30 = arith.truncf %29 : vector<16x128xf32> to vector<16x128xbf16>
    %c0_19 = arith.constant 0 : index
    %c0_20 = arith.constant 0 : index
    %31 = vector.load %arg8[%c0_19, %c0_20] : memref<16x128xbf16, #tpu.memory_space<vmem>>, vector<16x128xbf16>
    tpu.vector_store %arg8[%c0_19, %c0_20], %30 {strides = array<i32>} : memref<16x128xbf16, #tpu.memory_space<vmem>>, vector<16x128xbf16>,
    return
  }
  func.func @transform_0(%arg0: i32) -> (i32, i32) {
    %c0_i32 = arith.constant 0 : i32
    %c0_i32_0 = arith.constant 0 : i32
    return %arg0, %c0_i32 : i32, i32
  }
  func.func @transform_1(%arg0: i32) -> (i32, i32) {
    %c0_i32 = arith.constant 0 : i32
    %c0_i32_0 = arith.constant 0 : i32
    %c0_i32_1 = arith.constant 0 : i32
    return %c0_i32, %c0_i32_0 : i32, i32
  }
  func.func @transform_2(%arg0: i32) -> (i32, i32) {
    %c0_i32 = arith.constant 0 : i32
    %c0_i32_0 = arith.constant 0 : i32
    %c0_i32_1 = arith.constant 0 : i32
    return %c0_i32, %c0_i32_0 : i32, i32
  }
  func.func @transform_3(%arg0: i32) -> (i32, i32) {
    %c0_i32 = arith.constant 0 : i32
    %c0_i32_0 = arith.constant 0 : i32
    %c0_i32_1 = arith.constant 0 : i32
    return %c0_i32, %c0_i32_0 : i32, i32
  }
  func.func @transform_4(%arg0: i32) -> (i32, i32) {
    %c0_i32 = arith.constant 0 : i32
    %c0_i32_0 = arith.constant 0 : i32
    %c0_i32_1 = arith.constant 0 : i32
    return %c0_i32, %c0_i32_0 : i32, i32
  }
  func.func @transform_5(%arg0: i32) -> (i32, i32) {
    %c0_i32 = arith.constant 0 : i32
    %c0_i32_0 = arith.constant 0 : i32
    %c0_i32_1 = arith.constant 0 : i32
    return %c0_i32, %c0_i32_0 : i32, i32
  }
  func.func @transform_6(%arg0: i32) -> (i32, i32) {
    %c0_i32 = arith.constant 0 : i32
    %c0_i32_0 = arith.constant 0 : i32
    %c0_i32_1 = arith.constant 0 : i32
    return %c0_i32, %c0_i32_0 : i32, i32
  }
  func.func @transform_7(%arg0: i32) -> (i32, i32) {
    %c0_i32 = arith.constant 0 : i32
    %c0_i32_0 = arith.constant 0 : i32
    return %arg0, %c0_i32 : i32, i32
  }
}

</mosaic_0001>

<bundles_post_ra>
// kernel: tpu_custom_call.1
= control target key start
LH: loop header
LB: loop body
LE: loop exit
PB: predicated region body
PF: predicated region fallthrough
CT: control target
= control target key end

     0   :  { %12 = vsyncpa [#allocation3], 0  ;;  %s752_s0 = inlined_call_operand.hbm [shape: bf16[16,32], index: 0, kind: input, shape index: {}]   ;;  %s753_s1 = inlined_call_operand.hbm [shape: bf16[32,128], index: 1, kind: input, shape index: {}]   ;;  %s754_s2 = inlined_call_operand.vmem [shape: f32[1,128], index: 2, kind: input, shape index: {}]   ;;  %s755_s3 = inlined_call_operand.hbm [shape: f32[128,128], index: 3, kind: input, shape index: {}]   ;;  %s756_s4 = inlined_call_operand.vmem [shape: f32[1,128], index: 4, kind: input, shape index: {}]   ;;  %s757_s5 = inlined_call_operand.hbm [shape: f32[128,128], index: 5, kind: input, shape index: {}]   ;;  %s758_s6 = inlined_call_operand.vmem [shape: f32[1,128], index: 6, kind: input, shape index: {}]   ;;  %s759_s7 = inlined_call_operand.hbm [shape: bf16[16,128], index: 7, kind: output, shape index: {}]  }
   0x1   :  { %13 = vsyncpa [#allocation6], 0 }
   0x2   :  { %14 = vsyncpa [#allocation9], 0 }
   0x3   :  { %15 = vsyncpa [#allocation4], 0  ;;  %s668_s24 = smov [#allocation5]   ;;  %s669_s26 = smov [#allocation2]  }
   0x4   :  { %s33_s25 = sshll.u32 %s668_s24, 4  ;;  %s21_s27 = sshll.u32 %s669_s26, 4  ;;  %s34_s25 = int_to_ptr.vmem [resolvable:$true] %s33_s25  ;;  %s22_s27 = int_to_ptr.vmem [resolvable:$true] %s21_s27 }
   0x5   :  { %s568_s28 = scalar_lea.vmem %s34_s25, 256  ;;  %p573_p1 = scmp.lt.s32.totalorder %s34_s25, %s34_s25 }
   0x6   :  { %p569_p0 = scmp.ne.s32.totalorder %s34_s25, %s568_s28  ;;  %p574_p2 = scmp.lt.s32.totalorder %s568_s28, %s568_s28 }
   0x8   :  { %p575_p3 = por %p574_p2, %p573_p1 }
   0xa   :  { %p576_p4 = pnand %p575_p3, %p569_p0 }
   0xc   :  { %579 = shalt.err (!%p576_p4)
}
   0xd   :  { %s670_s29 = smov 64   ;;  %s671_s30 = smov 4  }
   0xe   :  { %39 = dma.hbm_to_vmem [thread:$0]  %s753_s1, 256, %s34_s25, [#allocation6], %s670_s29, %s670_s29, %s671_s30  }
   0xf   :  { %s588_s10 = scalar_lea.vmem %s22_s27, 128  ;;  %p593_p6 = scmp.lt.s32.totalorder %s22_s27, %s22_s27 }
  0x10   :  { %p589_p5 = scmp.ne.s32.totalorder %s22_s27, %s588_s10  ;;  %p594_p7 = scmp.lt.s32.totalorder %s588_s10, %s588_s10 }
  0x12   :  { %p595_p8 = por %p594_p7, %p593_p6 }
  0x14   :  { %p596_p9 = pnand %p595_p8, %p589_p5 }
  0x16   :  { %599 = shalt.err (!%p596_p9)
}
  0x17   :  { %27 = dma.hbm_to_vmem [thread:$0]  %s752_s0, 128, %s22_s27, [#allocation3], %s670_s29, %s670_s29, %s671_s30  }
  0x18   :  { %s672_s13 = smov [#allocation7]  }
  0x19   :  { %s47_s14 = sshll.u32 %s672_s13, 4  ;;  %s48_s14 = int_to_ptr.vmem [resolvable:$true] %s47_s14 }
  0x1a   :  { %s608_s15 = scalar_lea.vmem %s48_s14, 2048  ;;  %p613_p11 = scmp.lt.s32.totalorder %s48_s14, %s48_s14 }
  0x1b   :  { %p609_p10 = scmp.ne.s32.totalorder %s48_s14, %s608_s15  ;;  %p614_p12 = scmp.lt.s32.totalorder %s608_s15, %s608_s15 }
  0x1d   :  { %p615_p13 = por %p614_p12, %p613_p11 }
  0x1f   :  { %p616_p0 = pnand %p615_p13, %p609_p10 }
  0x21   :  { %619 = shalt.err (!%p616_p0)
}
  0x22   :  { %s673_s1 = smov 128   ;;  %s674_s16 = smov 8  }
  0x23   :  { %53 = dma.hbm_to_vmem [thread:$0]  %s755_s3, 2048, %s48_s14, [#allocation6], %s673_s1, %s673_s1, %s674_s16  }
  0x24   :  { %s675_s19 = smov [#allocation8]  }
  0x25   :  { %s61_s20 = sshll.u32 %s675_s19, 4  ;;  %s62_s20 = int_to_ptr.vmem [resolvable:$true] %s61_s20 }
  0x26   :  { %s628_s0 = scalar_lea.vmem %s62_s20, 2048  ;;  %p633_p2 = scmp.lt.s32.totalorder %s62_s20, %s62_s20 }
  0x27   :  { %p629_p1 = scmp.ne.s32.totalorder %s62_s20, %s628_s0  ;;  %p634_p3 = scmp.lt.s32.totalorder %s628_s0, %s628_s0 }
  0x29   :  { %p635_p4 = por %p634_p3, %p633_p2 }
  0x2b   :  { %p636_p5 = pnand %p635_p4, %p629_p1 }
  0x2d   :  { %639 = shalt.err (!%p636_p5)
}
  0x2e   :  { %67 = dma.hbm_to_vmem [thread:$0]  %s757_s5, 2048, %s62_s20, [#allocation9], %s673_s1, %s673_s1, %s674_s16  }
  0x2f   :  { %660 = dma.done.wait [#allocation3], 128  }
  0x30   :  { %661 = vsyncadd [#allocation3], 4294967168 }
  0x31   :  { %662 = dma.done.wait [#allocation6], 2304  }
  0x32   :  { %663 = vsyncadd [#allocation6], 4294964992 }
  0x33   :  { %664 = dma.done.wait [#allocation9], 2048  }
  0x34   :  { %665 = vsyncadd [#allocation9], 4294965248  ;;  %v676_v0 = vmov 0.0   ;;  %vm677_vm0 = vmmov 0   ;;  %v549_v1 = vld [vmem:[#allocation5 + $0x8] sm:$0xff]   ;;  %v550_v2 = vld [vmem:[#allocation5] sm:$0xff]  }
  0x35   :  { %460 = vmatprep.subr.bf16.mxu0 %v676_v0  ;;  %464 = vmatprep.mubr.msk.bf16.mxu0 %vm677_vm0, %v676_v0  ;;  %v175_v3 = vld [vmem:[#allocation7 + $0x78] sm:$0xff]  ;;  %v174_v4 = vld [vmem:[#allocation7 + $0x70] sm:$0xff]  ;;  %v551_v5 = vld [vmem:[#allocation2] sm:$0xff]   ;;  %vm113_vm1 = vcmask 261120  }
  0x36   :  { %461 = vmatpush3.bf16.msra.mxu0 %v549_v1  ;;  %468 = vmatprep.subr.mxu1 %v175_v3  ;;  %v173_v6 = vld [vmem:[#allocation7 + $0x68] sm:$0xff]  ;;  %v172_v7 = vld [vmem:[#allocation7 + $0x60] sm:$0xff]  ;;  %v171_v8 = vld [vmem:[#allocation7 + $0x58] sm:$0xff] }
  0x37   :  { %462 = vmatprep.subr.bf16.mxu0 %v676_v0  ;;  %469 = vmatpush3.msra.mxu1 %v175_v3  ;;  %v170_v9 = vld [vmem:[#allocation7 + $0x50] sm:$0xff]  ;;  %v169_v10 = vld [vmem:[#allocation7 + $0x48] sm:$0xff]  ;;  %v168_v11 = vld [vmem:[#allocation7 + $0x40] sm:$0xff] }
  0x38   :  { %470 = vmatprep.subr.mxu1 %v174_v4  ;;  %v167_v12 = vld [vmem:[#allocation7 + $0x38] sm:$0xff]  ;;  %v166_v13 = vld [vmem:[#allocation7 + $0x30] sm:$0xff]  ;;  %v165_v14 = vld [vmem:[#allocation7 + $0x28] sm:$0xff] }
  0x39   :  { %471 = vmatpush3.msra.mxu1 %v174_v4  ;;  %v164_v15 = vld [vmem:[#allocation7 + $0x20] sm:$0xff]  ;;  %v163_v16 = vld [vmem:[#allocation7 + $0x18] sm:$0xff]  ;;  %v162_v17 = vld [vmem:[#allocation7 + $0x10] sm:$0xff] }
  0x3a   :  { %463 = vmatpush3.bf16.msra.mxu0 %v550_v2  ;;  %472 = vmatprep.subr.mxu1 %v173_v6  ;;  %v161_v18 = vld [vmem:[#allocation7 + $0x8] sm:$0xff]  ;;  %v160_v19 = vld [vmem:[#allocation7] sm:$0xff]  ;;  %v275_v20 = vld [vmem:[#allocation8 + $0x78] sm:$0xff] }
  0x3b   :  { %473 = vmatpush3.msra.mxu1 %v173_v6  ;;  %v274_v21 = vld [vmem:[#allocation8 + $0x70] sm:$0xff]  ;;  %503 = vmatprep.subr.mxu0 %v275_v20  ;;  %v273_v22 = vld [vmem:[#allocation8 + $0x68] sm:$0xff]  ;;  %v272_v23 = vld [vmem:[#allocation8 + $0x60] sm:$0xff] }
  0x3c   :  { %474 = vmatprep.subr.mxu1 %v172_v7  ;;  %v271_v24 = vld [vmem:[#allocation8 + $0x58] sm:$0xff]  ;;  %v270_v25 = vld [vmem:[#allocation8 + $0x50] sm:$0xff]  ;;  %v269_v26 = vld [vmem:[#allocation8 + $0x48] sm:$0xff] }
  0x3d   :  { %465 = vmatmul.mubr.msk.bf16.vlgmr.msra.gmra.mxu0 %vm113_vm1, %v551_v5  ;;  %475 = vmatpush3.msra.mxu1 %v172_v7  ;;  %v268_v27 = vld [vmem:[#allocation8 + $0x40] sm:$0xff]  ;;  %v267_v28 = vld [vmem:[#allocation8 + $0x38] sm:$0xff]  ;;  %v266_v29 = vld [vmem:[#allocation8 + $0x30] sm:$0xff] }
  0x3e   :  { %476 = vmatprep.subr.mxu1 %v171_v8  ;;  %504 = vmatpush3.msra.mxu0 %v275_v20  ;;  %v265_v30 = vld [vmem:[#allocation8 + $0x28] sm:$0xff]  ;;  %v264_v31 = vld [vmem:[#allocation8 + $0x20] sm:$0xff]  ;;  %v263_v41 = vld [vmem:[#allocation8 + $0x18] sm:$0xff] }
  0x3f   :  { %477 = vmatpush3.msra.mxu1 %v171_v8  ;;  %505 = vmatprep.subr.mxu0 %v274_v21  ;;  %v405_v32 = vld [vmem:[%s754_s2] ss:$0 sm:$0xff]  ;;  %v262_v42 = vld [vmem:[#allocation8 + $0x10] sm:$0xff]  ;;  %v260_v44 = vld [vmem:[#allocation8] sm:$0xff] }
  0x40   :  { %478 = vmatprep.subr.mxu1 %v170_v9  ;;  %506 = vmatpush3.msra.mxu0 %v274_v21  ;;  %v261_v43 = vld [vmem:[#allocation8 + $0x8] sm:$0xff] }
  0x41   :  { %479 = vmatpush3.msra.mxu1 %v170_v9  ;;  %507 = vmatprep.subr.mxu0 %v273_v22  ;;  %v410_v45 = vld [vmem:[%s756_s4] ss:$0 sm:$0xff]  ;;  %s678_s4 = smov [#allocation10]  }
  0x42   :  { %480 = vmatprep.subr.mxu1 %v169_v10  ;;  %508 = vmatpush3.msra.mxu0 %v273_v22  ;;  %v411_v53 = vld [vmem:[%s758_s6] ss:$0 sm:$0xff]  ;;  %s391_s6 = sshll.u32 %s678_s4, 4  ;;  %s392_s6 = int_to_ptr.vmem [resolvable:$true] %s391_s6 }
  0x43   :  { %481 = vmatpush3.msra.mxu1 %v169_v10  ;;  %509 = vmatprep.subr.mxu0 %v272_v23  ;;  %s640_s26 = scalar_lea.vmem %s392_s6, 128  ;;  %p645_p7 = scmp.lt.s32.totalorder %s392_s6, %s392_s6 }
  0x44   :  { %482 = vmatprep.subr.mxu1 %v168_v11  ;;  %510 = vmatpush3.msra.mxu0 %v272_v23  ;;  %p641_p6 = scmp.ne.s32.totalorder %s392_s6, %s640_s26  ;;  %p646_p8 = scmp.lt.s32.totalorder %s640_s26, %s640_s26 }
  0x45   :  { %483 = vmatpush3.msra.mxu1 %v168_v11  ;;  %511 = vmatprep.subr.mxu0 %v271_v24 }
  0x46   :  { %484 = vmatprep.subr.mxu1 %v167_v12  ;;  %512 = vmatpush3.msra.mxu0 %v271_v24  ;;  %p647_p9 = por %p646_p8, %p645_p7 }
  0x47   :  { %485 = vmatpush3.msra.mxu1 %v167_v12  ;;  %513 = vmatprep.subr.mxu0 %v270_v25 }
  0x48   :  { %486 = vmatprep.subr.mxu1 %v166_v13  ;;  %514 = vmatpush3.msra.mxu0 %v270_v25  ;;  %p648_p10 = pnand %p647_p9, %p641_p6 }
  0x49   :  { %487 = vmatpush3.msra.mxu1 %v166_v13  ;;  %515 = vmatprep.subr.mxu0 %v269_v26 }
  0x4a   :  { %488 = vmatprep.subr.mxu1 %v165_v14  ;;  %516 = vmatpush3.msra.mxu0 %v269_v26 }
  0x4b   :  { %489 = vmatpush3.msra.mxu1 %v165_v14  ;;  %517 = vmatprep.subr.mxu0 %v268_v27 }
  0x4c   :  { %490 = vmatprep.subr.mxu1 %v164_v15  ;;  %518 = vmatpush3.msra.mxu0 %v268_v27 }
  0x4d   :  { %491 = vmatpush3.msra.mxu1 %v164_v15  ;;  %519 = vmatprep.subr.mxu0 %v267_v28 }
  0x4e   :  { %492 = vmatprep.subr.mxu1 %v163_v16  ;;  %520 = vmatpush3.msra.mxu0 %v267_v28 }
  0x4f   :  { %493 = vmatpush3.msra.mxu1 %v163_v16  ;;  %521 = vmatprep.subr.mxu0 %v266_v29 }
  0x50   :  { %494 = vmatprep.subr.mxu1 %v162_v17  ;;  %522 = vmatpush3.msra.mxu0 %v266_v29 }
  0x51   :  { %495 = vmatpush3.msra.mxu1 %v162_v17  ;;  %523 = vmatprep.subr.mxu0 %v265_v30 }
  0x52   :  { %496 = vmatprep.subr.mxu1 %v161_v18  ;;  %524 = vmatpush3.msra.mxu0 %v265_v30 }
  0x53   :  { %497 = vmatpush3.msra.mxu1 %v161_v18  ;;  %525 = vmatprep.subr.mxu0 %v264_v31 }
  0x54   :  { %498 = vmatprep.subr.mxu1 %v160_v19  ;;  %526 = vmatpush3.msra.mxu0 %v264_v31 }
  0x55   :  { %499 = vmatpush3.msra.mxu1 %v160_v19  ;;  %527 = vmatprep.subr.mxu0 %v263_v41 }
  0x56   :  { %528 = vmatpush3.msra.mxu0 %v263_v41 }
  0x57   :  { %529 = vmatprep.subr.mxu0 %v262_v42 }
  0x58   :  { %530 = vmatpush3.msra.mxu0 %v262_v42 }
  0x59   :  { %531 = vmatprep.subr.mxu0 %v261_v43 }
  0x5a   :  { %532 = vmatpush3.msra.mxu0 %v261_v43 }
  0x5b   :  { %533 = vmatprep.subr.mxu0 %v260_v44 }
  0x5c   :  { %534 = vmatpush3.msra.mxu0 %v260_v44 }
  0xfd   :  { %v151_v33 = vpop.f32.mrf.mxu0 }
  0xfe   :  { %v152_v34 = vadd.f32 %v405_v32, %v151_v33 }
  0xff   :  { %v466_v35 = vpop.f32.mrf.mxu0 }
 0x100   :  { %v158_v36 = vmax.f32 %v152_v34, 0.0 }
 0x101   :  { %v154_v37 = vpop.f32.mrf.mxu0 }
 0x102   :  { %v155_v38 = vadd.f32 %v405_v32, %v154_v37  ;;  %500 = vmatprep.mubr.f32.mxu1 %v158_v36 }
 0x103   :  { %v467_v39 = vpop.f32.mrf.mxu0 }
 0x104   :  { %v159_v40 = vmax.f32 %v155_v38, 0.0 }
 0x106   :  { %501 = vmatmul.mubr.f32.vlgmr.msra.gmra.mxu1 %v159_v40 }
 0x1c6   :  { %v502_v46 = vpop.f32.mrf.mxu1 }
 0x1c7   :  { %v255_v47 = vadd.f32 %v502_v46, %v410_v45 }
 0x1c8   :  { %v249_v48 = vpop.f32.mrf.mxu1 }
 0x1c9   :  { %v250_v49 = vadd.f32 %v410_v45, %v249_v48  ;;  %v259_v51 = vmax.f32 %v255_v47, 0.0 }
 0x1cb   :  { %v258_v50 = vmax.f32 %v250_v49, 0.0 }
 0x1cd   :  { %535 = vmatprep.mubr.f32.mxu0 %v258_v50 }
 0x1ce   :  { %536 = vmatmul.mubr.f32.vlgmr.msra.gmra.mxu0 %v259_v51 }
 0x28e   :  { %v537_v52 = vpop.f32.mrf.mxu0 }
 0x28f   :  { %v355_v56 = vadd.f32 %v537_v52, %v411_v53 }
 0x290   :  { %v349_v54 = vpop.f32.mrf.mxu0 }
 0x291   :  { %v350_v55 = vadd.f32 %v411_v53, %v349_v54 }
 0x293   :  { %358 = vmax.xlane.f32.xlu0 %v350_v55 }
 0x297   :  { %360 = vmax.xlane.f32.xlu0 %v355_v56 }
 0x31c   :  { %v359_v57 = vpop.xlane.xlu0 %358 }
 0x31d   :  { %v362_v58 = vsub.f32 %v350_v55, %v359_v57 }
 0x31f   :  { %v364_v59 = vmul.f32 1.442695, %v362_v58 }
 0x320   :  { %v361_v60 = vpop.xlane.xlu0 %360 }
 0x321   :  { %552 = vpow2.f32 %v364_v59  ;;  %v363_v61 = vsub.f32 %v355_v56, %v361_v60 }
 0x323   :  { %v366_v62 = vmul.f32 1.442695, %v363_v61 }
 0x325   :  { %554 = vpow2.f32 %v366_v62 }
 0x32e   :  { %v553_v63 = vpop.eup %552 }
 0x32f   :  { %368 = vadd.xlane.f32.xlu1 %v553_v63 }
 0x332   :  { %v555_v0 = vpop.eup %554 }
 0x333   :  { %370 = vadd.xlane.f32.xlu1 %v555_v0 }
 0x3b8   :  { %v369_v1 = vpop.xlane.xlu1 %368 }
 0x3b9   :  { %556 = vrcp.f32 %v369_v1 }
 0x3bc   :  { %v371_v2 = vpop.xlane.xlu1 %370 }
 0x3bd   :  { %558 = vrcp.f32 %v371_v2 }
 0x3c6   :  { %v557_v3 = vpop.eup %556 }
 0x3c7   :  { %v374_v5 = vmul.f32 %v557_v3, %v553_v63 }
 0x3ca   :  { %v559_v4 = vpop.eup %558 }
 0x3cb   :  { %v375_v6 = vmul.f32 %v559_v4, %v555_v0 }
 0x3cd   :  { %v419_v7 = vpack.c.bf16 %v375_v6, %v374_v5 }
 0x3cf   :  { %420 = vst [vmem:[#allocation10] sm:$0xff] %v419_v7  }
 0x3d0   :  { %651 = shalt.err (!%p648_p10)
}
 0x3d1   :  { %397 = dma.vmem_to_hbm [thread:$0]  %s392_s6, 128, %s759_s7, [#allocation4], %s670_s29, %s670_s29, %s671_s30  }
 0x3d2   :  { %666 = dma.done.wait [#allocation4], 128  }
 0x3d3   :  { %667 = vsyncadd [#allocation4], 4294967168 }
 0x3d4   :  { %401 = vsyncpa [#allocation3], 1 }
 0x3d5   :  { %402 = vsyncpa [#allocation6], 1 }
 0x3d6   :  { %403 = vsyncpa [#allocation9], 1 }
 0x3d7   :  { %404 = vsyncpa [#allocation4], 1 }

</bundles_post_ra>
